<compile_context>
chip_gen: v7x
topology: tpu7x:2x2x1
jax: 0.10.0
libtpu: 0.0.40
codegen_flags: <defaults>
</compile_context>

<pallas_src>
import jax
import jax.numpy as jnp
from jax.experimental import pallas as pl
from jax.experimental.pallas import tpu as pltpu

# Max lanes per block: multiple of 128; an f32 lane-row at this cap is 128 KiB,
# so even a forced 8-row batch tile stays ~1 MiB.
_TL_CAP = 32768


def _pos_embed_kernel(w_ref, o_ref):
    # w_ref: (1, tl)  lane-dense slice of the flattened position-embedding row
    # o_ref: (bt, tl) output slab for this (batch-chunk, lane-chunk) tile
    o_ref[...] = jnp.broadcast_to(w_ref[...], o_ref.shape)


def _vmem_budget():
    """Generation-aware (scoped VMEM limit, per-output-block byte target)."""
    vmem_cap = 64 << 20  # conservative fallback = v7x per-core physical VMEM
    try:
        info = pltpu.get_tpu_info()
        cap = getattr(info, "vmem_capacity_bytes", None)
        if cap:
            vmem_cap = int(cap)
    except Exception:
        pass
    scoped = min(32 << 20, vmem_cap // 2)    # safe on v5e (128), v6e (128), v7x (64)
    tile_target = max(2 << 20, scoped // 4)  # double-buffered output fits scoped
    return scoped, tile_target


def _choose_tiles(B, L, itemsize, tile_target):
    # Lane tile: the full row if it fits under the cap (works even when L is
    # not a multiple of 128), else a 128-multiple cap (ragged tail is masked).
    tl = L if L <= _TL_CAP else _TL_CAP

    tgt_elems = max(1, tile_target // itemsize)
    bt = max(1, min(B, tgt_elems // max(tl, 1)))
    if bt < B:
        bt = max(8, (bt // 8) * 8)
        # Prefer the largest multiple of 8 <= bt that divides B evenly, so the
        # last batch block is not ragged (keeps stores unmasked).
        for m in range(bt, 7, -8):
            if B % m == 0:
                bt = m
                break
        bt = min(bt, B)

    # v7x megacore: guarantee >= 2 grid steps along the parallel axes so both
    # TensorCores (and their DMA paths) write on this bandwidth-bound kernel.
    if pl.cdiv(B, bt) * pl.cdiv(L, tl) == 1:
        if L % 128 == 0 and L >= 256:
            tl = ((L // 2 + 127) // 128) * 128      # split lanes, keep 128-multiple
        elif B >= 16:
            bt = max(8, ((B // 2) // 8) * 8)        # split batch, keep sublane-aligned
    return bt, tl


def position_embedding_learned(x, weight):
    """Pallas equivalent of PositionEmbeddingLearned.forward(x).

    x:      (B, N, ...)  -- only the shape is used (x.size(0), x.size(1))
    weight: (in_dim, out_dim) learned embedding table
    returns (B, N, out_dim) with the same dtype as `weight`.
    """
    B, n = x.shape[0], x.shape[1]
    in_dim, out_dim = weight.shape
    assert n <= in_dim, "sequence length exceeds embedding table size"

    L = n * out_dim
    itemsize = jnp.dtype(weight.dtype).itemsize

    # Only rows [0, n) are ever read; slice in the wrapper and present them as
    # one lane-dense row so the kernel's store path is unmasked.
    w_flat = weight[:n].reshape(1, L)

    scoped_vmem, tile_target = _vmem_budget()
    bt, tl = _choose_tiles(B, L, itemsize, tile_target)
    grid = (pl.cdiv(B, bt), pl.cdiv(L, tl))

    out_flat = pl.pallas_call(
        _pos_embed_kernel,
        out_shape=jax.ShapeDtypeStruct((B, L), weight.dtype),
        grid=grid,
        in_specs=[pl.BlockSpec((1, tl), lambda i, j: (0, j))],
        out_specs=pl.BlockSpec((bt, tl), lambda i, j: (i, j)),
        compiler_params=pltpu.CompilerParams(
            dimension_semantics=("parallel", "parallel"),
            vmem_limit_bytes=scoped_vmem,
        ),
    )(w_flat)

    # Contiguous reshape back to (B, N, out_dim): layout plumbing only.
    return out_flat.reshape(B, n, out_dim)


if __name__ == "__main__":
    key = jax.random.PRNGKey(0)
    k_w, k_x = jax.random.split(key)

    in_dim, out_dim = 16, 32          # nn.Embedding(in_dim, out_dim)
    B, N, C = 2, 8, 4                 # x: (batch, seq, channels)

    # nn.init.uniform_ -> U[0, 1), deterministic synthetic init
    weight = jax.random.uniform(k_w, (in_dim, out_dim), dtype=jnp.float32)
    x = jax.random.normal(k_x, (B, N, C), dtype=jnp.float32)

    pos = position_embedding_learned(x, weight)
    pos = jax.block_until_ready(pos)

    # reference: embed(arange(N)) broadcast over batch
    ref = jnp.broadcast_to(weight[:N, :][None], (B, N, out_dim))
    assert pos.shape == (B, N, out_dim)
    assert pos.dtype == weight.dtype
    assert jnp.allclose(pos, ref), "mismatch vs reference"

    print("KERNEL_OK")
</pallas_src>

<mosaic_0001>
module attributes {stable_mosaic.version = 11 : i64} {
  func.func @_pos_embed_kernel(%arg0: i32, %arg1: i32, %arg2: memref<1x128xf32, #tpu.memory_space<vmem>>, %arg3: memref<2x128xf32, #tpu.memory_space<vmem>>) attributes {dimension_semantics = [#tpu.dimension_semantics<parallel>, #tpu.dimension_semantics<parallel>], iteration_bounds = array<i64: 1, 2>, scalar_prefetch = 0 : i64, scratch_operands = 0 : i64, tpu.core_type = #tpu.core_type<tc>, window_params = [{transform_indices = @transform_0, window_bounds = array<i64: 1, 128>}, {transform_indices = @transform_1, window_bounds = array<i64: 2, 128>}]} {
    %c0 = arith.constant 0 : index
    %c0_0 = arith.constant 0 : index
    %0 = vector.load %arg2[%c0, %c0_0] : memref<1x128xf32, #tpu.memory_space<vmem>>, vector<1x128xf32>
    %1 = vector.shape_cast %0 : vector<1x128xf32> to vector<1x128xf32>
    %2 = vector.broadcast %1 : vector<1x128xf32> to vector<2x128xf32>
    %c0_1 = arith.constant 0 : index
    %c0_2 = arith.constant 0 : index
    %3 = vector.load %arg3[%c0_1, %c0_2] : memref<2x128xf32, #tpu.memory_space<vmem>>, vector<2x128xf32>
    tpu.vector_store %arg3[%c0_1, %c0_2], %2 {strides = array<i32>} : memref<2x128xf32, #tpu.memory_space<vmem>>, vector<2x128xf32>,
    return
  }
  func.func @transform_0(%arg0: i32, %arg1: i32) -> (i32, i32) {
    %c0_i32 = arith.constant 0 : i32
    %c0_i32_0 = arith.constant 0 : i32
    return %c0_i32, %arg1 : i32, i32
  }
  func.func @transform_1(%arg0: i32, %arg1: i32) -> (i32, i32) {
    %c0_i32 = arith.constant 0 : i32
    return %arg0, %arg1 : i32, i32
  }
}

</mosaic_0001>

<bundles_post_ra>
// kernel: tpu_custom_call.1
= control target key start
LH: loop header
LB: loop body
LE: loop exit
PB: predicated region body
PF: predicated region fallthrough
CT: control target
= control target key end

     0   :  { %6 = vsyncpa [#allocation3], 0  ;;  %s617_s0 = inlined_call_operand.hbm [shape: f32[1,256], index: 0, kind: input, shape index: {}]   ;;  %s618_s1 = inlined_call_operand.hbm [shape: f32[2,256], index: 1, kind: output, shape index: {}]  }
   0x1   :  { %8 = vsyncpa [#allocation3 + $0x1], 0 }
   0x2   :  { %9 = vsyncpa [#allocation4], 0 }
   0x3   :  { %11 = vsyncpa [#allocation4 + $0x1], 0  ;;  %s444_s6 = smov 0   ;;  %s446_s7 = smov 0  }
   0x4   :  { %s448_s8 = smov 0   ;;  %s450_s9 = smov 0  }
   0x5   :  { %s452_s10 = smov 0   ;;  %s454_s11 = smov 0  }
   0x6 LB: > { %s244_s12 = sadd.s32 4294967295, %s430_s11   ;;  %s245_s13 = sadd.s32 4294967294, %s430_s11   ;;  %s430_s11 = sphi %s454_s11, %s17_s11   ;;  %s426_s10 = sphi %s452_s10, %s634_s10   ;;  %s422_s9 = sphi %s450_s9, %s633_s9   ;;  %s418_s8 = sphi %s448_s8, %s632_s8   ;;  %s414_s7 = sphi %s446_s7, %s631_s7   ;;  %s410_s6 = sphi %s444_s6, %s630_s6  }
   0x7   : > { %s26_s14 = sadd.s32 1, %s426_s10  ;;  %s36_s15 = sadd.s32 1, %s418_s8 }
   0x8   : > { %p27_p0 = scmp.ge.s32.totalorder %s26_s14, 2  ;;  %p43_p1 = scmp.ne.s32.totalorder %s418_s8, %s414_s7 }
   0x9   : > { %p44_p2 = scmp.eq.s32.totalorder %s430_s11, 0  ;;  %p49_p3 = scmp.ne.s32.totalorder %s414_s7, %s410_s6 }
   0xa   : > { %s636_s14 = smov (%p27_p0, %s26_s14), 0  ;;  %p50_p5 = scmp.eq.s32.totalorder %s244_s12, 0 }
   0xb   : > { %p485_p4 = por %p44_p2, %p43_p1  ;;  %s33_s17 = ssub.s32 %s426_s10, %s636_s14 }
   0xc   : > { %p75_p6 = scmp.eq.s32.totalorder %s244_s12, 1  ;;  %p34_p7 = scmp.eq.s32.totalorder %s33_s17, 0 }
   0xd   : > { %p491_p8 = por %p50_p5, %p49_p3  ;;  %p81_p10 = scmp.eq.s32.totalorder %s245_s13, 1 }
   0xe   : > { %p495_p9 = por %p75_p6, %p43_p1  ;;  %p268_p13 = scmp.lt.s32.totalorder %s430_s11, 2 }
   0xf   : > { %s500_s20 = scalar_select %p34_p7, %s418_s8, %s36_s15  }
  0x10   : > { %s622_s19 = scalar_select %p495_p9, 1, 0 }
  0x11   : > { %p502_p11 = por %p81_p10, %p49_p3  ;;  %s101_s22 = sand.u32 1, %s418_s8  }
  0x12   : > { %s248_s23 = sshll.u32 %s426_s10, 4  ;;  %s104_s24 = scalar_lea.vmem [#allocation2], %s101_s22 }
  0x13   : > { %s623_s21 = scalar_select %p502_p11, 1, 0 }
  0x14   : > { %s111_s25 = sshll.u32 %s104_s24, 4  ;;  %s513_s28 = scalar_lea.hbm %s617_s0, %s248_s23  ;;  %s515_s25 = int_to_ptr.vmem [resolvable:$true] %s111_s25 }
  0x15   : > { %p519_p0 = pnand %p268_p13, %p485_p4  ;;  %s102_s30 = scalar_lea.sflag [#allocation3], %s101_s22 }
  0x16   : > { %s318_s2 = scalar_lea.hbm %s513_s28, 16  ;;  %s323_s5 = scalar_lea.hbm %s617_s0, 32 }
  0x17   : > { %p319_p3 = scmp.ne.s32.totalorder %s513_s28, %s318_s2  ;;  %p320_p5 = pneg %p519_p0 }
  0x18   : > { %p324_p4 = scmp.lt.u32.totalorder %s513_s28, %s617_s0  ;;  %p325_p10 = scmp.lt.u32.totalorder %s323_s5, %s318_s2 }
  0x19   : > { %p321_p6 = pnand %p320_p5, %p319_p3  ;;  %p327_p12 = scmp.lt.u32.totalorder %s318_s2, %s513_s28 }
  0x1a   : > { %p326_p13 = por %p325_p10, %p324_p4 }
  0x1b   : > { %p322_p7 = pneg %p321_p6 }
  0x1c   : > { %p328_p1 = por %p327_p12, %p326_p13 }
  0x1e   : > { %p329_p2 = pnand %p328_p1, %p322_p7 }
  0x20   : > { %332 = shalt.err (!%p329_p2)
}
  0x21   : > { %s333_s15 = scalar_lea.vmem %s515_s25, 16  ;;  %s432_s16 = smov [#allocation2]  }
  0x22   : > { %p334_p3 = scmp.ne.s32.totalorder %s515_s25, %s333_s15  ;;  %s338_s17 = sshll.u32 %s432_s16, 4  ;;  %s339_s17 = int_to_ptr.vmem [resolvable:$false] %s338_s17 }
  0x23   : > { %s340_s22 = scalar_lea.vmem %s339_s17, 32  ;;  %p341_p9 = scmp.lt.s32.totalorder %s515_s25, %s339_s17 }
  0x24   : > { %p336_p6 = pnand %p334_p3, %p320_p5  ;;  %p342_p4 = scmp.lt.s32.totalorder %s340_s22, %s333_s15 }
  0x26   : > { %p337_p11 = pneg %p336_p6  ;;  %p343_p10 = por %p342_p4, %p341_p9 }
  0x28   : > { %p344_p12 = pnand %p343_p10, %p337_p11 }
  0x2a   : > { %347 = shalt.err (!%p344_p12)
}
  0x2b   : > { %263 = dma.hbm_to_vmem [thread:$0]  (!%p519_p0), %s513_s28, 16, %s515_s25, %s102_s30  }
  0x2c   : > { %p625_p1 = scmp.lt.s32.totalorder %s430_s11, 3  ;;  %p626_p2 = scmp.ge.s32.totalorder %s430_s11, 1 }
  0x2e   : > { %p117_p5 = pnand %p626_p2, %p625_p1 }
  0x2f   : > { %s555_s23 = sand.u32 (!%p117_p5), 1, %s414_s7  }
  0x30   : > { %120 = sbr.rel (%p117_p5) target bundleno = 82 (0x52), region = 24  ;;  %s123_s24 = scalar_lea.sflag (!%p117_p5), [#allocation3], %s555_s23 }
  0x31   : > { %s125_s26 = scalar_lea.vmem (!%p117_p5), [#allocation2], %s555_s23 }
  0x37   : > { %401 = dma.done.wait (%p491_p8), %s123_s24, 16  }
  0x38   : > { %403 = vsyncadd (%p491_p8), %s123_s24, 4294967280  ;;  %s250_s25 = sshll.u32 %s555_s23, 1  ;;  %s253_s29 = sshll.u32 %s422_s9, 5  ;;  %v251_v0 = vld [vmem:[%s125_s26] ss:$0 sm:$0xff] }
  0x39   : > { %s142_s27 = scalar_lea.vmem [#allocation5], %s250_s25  ;;  %s570_s3 = scalar_lea.hbm %s618_s1, %s253_s29 }
  0x3a   : > { %s167_s28 = sshll.u32 %s142_s27, 4  ;;  %150 = vst [vmem:[%s142_s27] sm:$0x3] %v251_v0  ;;  %s152_s18 = scalar_lea.sflag [#allocation4], %s555_s23  ;;  %s565_s28 = int_to_ptr.vmem [resolvable:$true] %s167_s28 }
  0x3b   : > { %s348_s4 = scalar_lea.vmem %s565_s28, 32  ;;  %p627_p9 = scmp.ne.s32.totalorder %s622_s19, 0 }
  0x3c   : > { %p349_p8 = scmp.ne.s32.totalorder %s565_s28, %s348_s4  ;;  %s433_s5 = smov [#allocation5]  }
  0x3d   : > { %s352_s9 = sshll.u32 %s433_s5, 4  ;;  %s353_s9 = int_to_ptr.vmem [resolvable:$false] %s352_s9 }
  0x3e   : > { %p350_p11 = pnand %p349_p8, %p627_p9  ;;  %s354_s12 = scalar_lea.vmem %s353_s9, 64 }
  0x3f   : > { %p355_p7 = scmp.lt.s32.totalorder %s565_s28, %s353_s9  ;;  %p356_p13 = scmp.lt.s32.totalorder %s354_s12, %s348_s4 }
  0x40   : > { %p351_p0 = pneg %p350_p11 }
  0x41   : > { %p357_p3 = por %p356_p13, %p355_p7 }
  0x43   : > { %p358_p6 = pnand %p357_p3, %p351_p0 }
  0x45   : > { %361 = shalt.err (!%p358_p6)
}
  0x46   : > { %s362_s13 = scalar_lea.hbm %s570_s3, 32  ;;  %s366_s17 = scalar_lea.hbm %s618_s1, 64 }
  0x47   : > { %p363_p4 = scmp.ne.s32.totalorder %s570_s3, %s362_s13  ;;  %p367_p1 = scmp.lt.u32.totalorder %s570_s3, %s618_s1 }
  0x48   : > { %p368_p2 = scmp.lt.u32.totalorder %s366_s17, %s362_s13  ;;  %p370_p8 = scmp.lt.u32.totalorder %s362_s13, %s570_s3 }
  0x49   : > { %p364_p10 = pnand %p363_p4, %p627_p9 }
  0x4a   : > { %p369_p5 = por %p368_p2, %p367_p1 }
  0x4b   : > { %p365_p12 = pneg %p364_p10 }
  0x4c   : > { %p371_p11 = por %p370_p8, %p369_p5 }
  0x4e   : > { %p372_p0 = pnand %p371_p11, %p365_p12 }
  0x50   : > { %375 = shalt.err (!%p372_p0)
}
  0x51   : > { %258 = dma.vmem_to_hbm [thread:$0]  (%p627_p9), %s565_s28, 32, %s570_s3, %s152_s18  }
  0x52 PF: > { %s179_s24 = sand.u32 1, %s410_s6   ;;  %p628_p7 = scmp.ne.s32.totalorder %s623_s21, 0 }
  0x53   : > { %p629_p13 = scmp.ge.s32.totalorder %s430_s11, 2  ;;  %s180_s26 = scalar_lea.sflag [#allocation4], %s179_s24 }
  0x55   : > { %p265_p3 = pnand %p629_p13, %p628_p7 }
  0x57   : > { %405 = dma.done.wait (!%p265_p3), %s180_s26, 32  }
  0x58   : > { %407 = vsyncadd (!%p265_p3), %s180_s26, 4294967264  ;;  %s17_s11 = sadd.s32 1, %s430_s11   ;;  %s630_s6 = smov %s414_s7 }
  0x59   : > { %p14_p6 = scmp.ge.s32.totalorder %s17_s11, 4   ;;  %s631_s7 = smov %s418_s8 }
  0x5a   : > { %s632_s8 = smov %s500_s20  ;;  %s633_s9 = smov %s426_s10 }
  0x5b   : > { %s634_s10 = smov %s636_s14  ;;  %16 = sbr.rel (!%p14_p6) target bundleno = 6 (0x6), region = 69 }
  0x62   :  { %185 = vsyncpa [#allocation3], 1 }
  0x63   :  { %187 = vsyncpa [#allocation3 + $0x1], 1 }
  0x64   :  { %188 = vsyncpa [#allocation4], 1 }
  0x65   :  { %190 = vsyncpa [#allocation4 + $0x1], 1 }

</bundles_post_ra>
